<compile_context>
chip_gen: v6e
topology: v6e:2x2x1
jax: 0.10.0
libtpu: 0.0.40
codegen_flags: <defaults>
</compile_context>

<pallas_src>
import functools

import jax
import jax.numpy as jnp
import numpy as np
from jax.experimental import pallas as pl
from jax.experimental.pallas import tpu as pltpu

LEAKY_SLOPE = 0.01
BN_EPS = 1e-5
LANE = 128          # every feature dimension is zero-padded to the lane width
N_VEC_ROWS = 8      # [b1, b2, b3, gamma, beta, 0, 0, 0] — one f32 vreg


def _leaky_relu(x):
    # vmul + vmax instead of vcmp + vsel; no mask vreg materialized.
    return jnp.maximum(x, LEAKY_SLOPE * x)


def actor_kernel(xv_ref, w_ref, o_ref, *, batch):
    """Whole Actor forward in one kernel (everything fits in VMEM).

    xv_ref: (B+8, 128) f32       rows 0..B-1  : state, zero-padded to 128 lanes
                                 rows B..B+4  : b1, b2, b3, gamma, beta
                                 rows B+5..B+7: zero padding
    w_ref : (3, 128, 128) f32/bf16  [W1; W2; W3], zero-padded, lane-dense
    o_ref : (B, 128) f32         only [:, :action_size] is meaningful
    """
    f32 = jnp.float32
    cdt = w_ref.dtype                      # matmul compute dtype (f32 or bf16)

    x = xv_ref[0:batch, :]                 # (B, 128)   f32
    v = xv_ref[batch:batch + N_VEC_ROWS, :]  # (8, 128) one aligned vreg load
    b1, b2, b3 = v[0:1, :], v[1:2, :], v[2:3, :]
    gamma, beta = v[3:4, :], v[4:5, :]

    # fc1 / fc2 / fc3 + leaky_relu — three 128-lane-dense MXU matmuls, f32 accum.
    h = jnp.dot(x.astype(cdt), w_ref[0], preferred_element_type=f32)
    h = _leaky_relu(h + b1)
    h = jnp.dot(h.astype(cdt), w_ref[1], preferred_element_type=f32)
    h = _leaky_relu(h + b2)
    h = jnp.dot(h.astype(cdt), w_ref[2], preferred_element_type=f32)
    h = _leaky_relu(h + b3)

    # BatchNorm1d (training mode: batch mean, biased variance), one-pass stats
    # (sum + sum-of-squares), affine folded into a single scale/shift, then tanh.
    # Pad lanes: h is exactly 0 there and gamma is zero-padded, so scale = 0 and
    # the output of pad lanes is tanh(0) = 0 (finite).
    inv_b = 1.0 / batch
    s1 = jnp.sum(h, axis=0, keepdims=True)
    s2 = jnp.sum(h * h, axis=0, keepdims=True)
    mean = s1 * inv_b
    var = s2 * inv_b - mean * mean
    scale = gamma * jax.lax.rsqrt(var + BN_EPS)
    o_ref[...] = jnp.tanh(h * scale + (beta - mean * scale))


def _pad_lane(a, target=LANE, axis=-1):
    pad = target - a.shape[axis]
    if pad <= 0:
        return a
    widths = [(0, 0)] * a.ndim
    widths[axis] = (0, pad)
    return jnp.pad(a, widths)


def pack_actor_params(params, compute_dtype=jnp.bfloat16):
    """Pack parameters into lane-dense slabs ONCE (at init / param update time).

    Returns:
      w_slab: (3, 128, 128) compute_dtype  — [W1; W2; W3], zero-padded.
      v_slab: (8, 128)      float32        — rows [b1, b2, b3, gamma, beta, 0, 0, 0].

    bf16 weights are fine on v5e/v6e/v7x: the MXU consumes bf16 natively with
    f32 accumulation; all BN / tanh math stays f32 inside the kernel.
    """
    w1, b1, w2, b2, w3, b3, gamma, beta = params
    state_size, fc1_units = w1.shape
    fc2_units, action_size = w3.shape
    for name, dim in (("state_size", state_size), ("fc1_units", fc1_units),
                      ("fc2_units", fc2_units), ("action_size", action_size)):
        assert dim <= LANE, f"{name}={dim} exceeds the 128-lane slab packing"

    w_slab = jnp.stack([
        _pad_lane(_pad_lane(w1, axis=0), axis=1),
        _pad_lane(_pad_lane(w2, axis=0), axis=1),
        _pad_lane(_pad_lane(w3, axis=0), axis=1),
    ]).astype(compute_dtype)                                    # (3, 128, 128)

    # NOTE: gamma's pad lanes MUST be zero (they are — jnp.pad pads with zeros)
    # so that scale = 0 on pad lanes and the kernel output stays finite there.
    v_rows = [b1, b2, b3, gamma, beta]
    v_slab = jnp.stack(
        [_pad_lane(r.reshape(-1).astype(jnp.float32)) for r in v_rows]
        + [jnp.zeros((LANE,), jnp.float32)] * (N_VEC_ROWS - len(v_rows))
    )                                                            # (8, 128)
    return w_slab, v_slab


@functools.partial(jax.jit, static_argnames=("action_size",))
def actor_forward(state, w_slab, v_slab, *, action_size):
    """Per-call path: pad state, stack the pre-packed vector rows under it,
    launch the fused kernel (2 input DMAs + 1 output DMA)."""
    B = state.shape[0]

    # (B+8, 128) f32: state rows then [b1,b2,b3,gamma,beta,0,0,0]. With B a
    # multiple of 8 the in-kernel row slices stay sublane-aligned views.
    xv = jnp.concatenate([_pad_lane(state.astype(jnp.float32)), v_slab], axis=0)

    itemsize = np.dtype(w_slab.dtype).itemsize
    cost = pl.CostEstimate(
        flops=2 * B * LANE * LANE * 3,
        transcendentals=B * LANE + LANE,            # tanh + rsqrt
        bytes_accessed=(xv.size * 4 + w_slab.size * itemsize + B * LANE * 4),
    )

    vmem = pl.BlockSpec(memory_space=pltpu.MemorySpace.VMEM)
    out = pl.pallas_call(
        functools.partial(actor_kernel, batch=B),
        out_shape=jax.ShapeDtypeStruct((B, LANE), jnp.float32),
        in_specs=[vmem, vmem],
        out_specs=vmem,
        cost_estimate=cost,
    )(xv, w_slab)
    return out[:, :action_size]


def init_actor_params(key, state_size, action_size, fc1_units=64, fc2_units=64):
    """Parameter init mirroring the PyTorch module's shapes/ranges.

    nn.Linear weight is (out, in); we keep (in, out) for x @ W. The PyTorch
    code's hidden_init uses weight.size()[0] == out_features as fan_in.
    """
    ks = jax.random.split(key, 6)

    lim1 = 1.0 / np.sqrt(fc1_units)
    w1 = jax.random.uniform(ks[0], (state_size, fc1_units), jnp.float32, -lim1, lim1)
    b1 = jax.random.uniform(ks[1], (1, fc1_units), jnp.float32,
                            -1.0 / np.sqrt(state_size), 1.0 / np.sqrt(state_size))

    lim2 = 1.0 / np.sqrt(fc2_units)
    w2 = jax.random.uniform(ks[2], (fc1_units, fc2_units), jnp.float32, -lim2, lim2)
    b2 = jax.random.uniform(ks[3], (1, fc2_units), jnp.float32,
                            -1.0 / np.sqrt(fc1_units), 1.0 / np.sqrt(fc1_units))

    w3 = jax.random.uniform(ks[4], (fc2_units, action_size), jnp.float32, -0.003, 0.003)
    b3 = jax.random.uniform(ks[5], (1, action_size), jnp.float32,
                            -1.0 / np.sqrt(fc2_units), 1.0 / np.sqrt(fc2_units))

    # BatchNorm1d affine params (default init: gamma=1, beta=0).
    gamma = jnp.ones((1, action_size), jnp.float32)
    beta = jnp.zeros((1, action_size), jnp.float32)

    return (w1, b1, w2, b2, w3, b3, gamma, beta)


def actor_reference(state, params, compute_dtype=jnp.float32):
    """Pure-JAX reference (same matmul quantization policy as the kernel,
    classical two-pass BatchNorm)."""
    w1, b1, w2, b2, w3, b3, gamma, beta = params
    f32 = jnp.float32

    def dense(x, w, b):
        y = jnp.dot(x.astype(compute_dtype), w.astype(compute_dtype),
                    preferred_element_type=f32) + b
        return jnp.maximum(y, LEAKY_SLOPE * y)

    h = dense(state, w1, b1)
    h = dense(h, w2, b2)
    h = dense(h, w3, b3)
    mean = jnp.mean(h, axis=0, keepdims=True)
    var = jnp.mean((h - mean) ** 2, axis=0, keepdims=True)
    h = (h - mean) * jax.lax.rsqrt(var + BN_EPS) * gamma + beta
    return jnp.tanh(h)


if __name__ == "__main__":
    # Small shapes consistent with the module: batch=8, state_size=16,
    # action_size=4, fc1_units=fc2_units=64.
    B, S, A = 8, 16, 4

    key = jax.random.PRNGKey(0)
    k_params, k_state = jax.random.split(key)

    params = init_actor_params(k_params, state_size=S, action_size=A)
    state = jax.random.normal(k_state, (B, S), jnp.float32)

    # f32 matmul path: tight-ish tolerance vs. reference (one-pass BN stats in
    # the kernel vs two-pass in the reference differ only at float32 rounding).
    w_f32, v_f32 = pack_actor_params(params, compute_dtype=jnp.float32)
    out = jax.block_until_ready(actor_forward(state, w_f32, v_f32, action_size=A))
    ref = actor_reference(state, params, compute_dtype=jnp.float32)
    np.testing.assert_allclose(np.asarray(out), np.asarray(ref), rtol=2e-4, atol=2e-5)

    # bf16 weight path (default packing; halves weight-DMA bytes on every
    # generation — v5e's MXU also consumes bf16 with f32 accumulation).
    w_bf16, v_bf16 = pack_actor_params(params, compute_dtype=jnp.bfloat16)
    out_bf16 = jax.block_until_ready(
        actor_forward(state, w_bf16, v_bf16, action_size=A))
    ref_bf16 = actor_reference(state, params, compute_dtype=jnp.bfloat16)
    np.testing.assert_allclose(np.asarray(out_bf16), np.asarray(ref_bf16),
                               rtol=1e-2, atol=1e-2)

    print("KERNEL_OK")
</pallas_src>

<mosaic_0001>
module attributes {stable_mosaic.version = 11 : i64} {
  func.func @actor_kernel(%arg0: memref<16x128xf32, #tpu.memory_space<vmem>>, %arg1: memref<3x128x128xf32, #tpu.memory_space<vmem>>, %arg2: memref<8x128xf32, #tpu.memory_space<vmem>>) attributes {dimension_semantics = [], scalar_prefetch = 0 : i64, scratch_operands = 0 : i64, tpu.core_type = #tpu.core_type<tc>} {
    %c0 = arith.constant 0 : index
    %c0_0 = arith.constant 0 : index
    %0 = vector.load %arg0[%c0, %c0_0] : memref<16x128xf32, #tpu.memory_space<vmem>>, vector<8x128xf32>
    %c8 = arith.constant 8 : index
    %c0_1 = arith.constant 0 : index
    %1 = vector.load %arg0[%c8, %c0_1] : memref<16x128xf32, #tpu.memory_space<vmem>>, vector<8x128xf32>
    %2 = vector.extract_strided_slice %1 {offsets = [0, 0], sizes = [1, 128], strides = [1, 1]} : vector<8x128xf32> to vector<1x128xf32>
    %3 = vector.extract_strided_slice %1 {offsets = [1, 0], sizes = [1, 128], strides = [1, 1]} : vector<8x128xf32> to vector<1x128xf32>
    %4 = vector.extract_strided_slice %1 {offsets = [2, 0], sizes = [1, 128], strides = [1, 1]} : vector<8x128xf32> to vector<1x128xf32>
    %5 = vector.extract_strided_slice %1 {offsets = [3, 0], sizes = [1, 128], strides = [1, 1]} : vector<8x128xf32> to vector<1x128xf32>
    %6 = vector.extract_strided_slice %1 {offsets = [4, 0], sizes = [1, 128], strides = [1, 1]} : vector<8x128xf32> to vector<1x128xf32>
    %c0_2 = arith.constant 0 : index
    %c0_3 = arith.constant 0 : index
    %c0_4 = arith.constant 0 : index
    %7 = vector.load %arg1[%c0_2, %c0_3, %c0_4] : memref<3x128x128xf32, #tpu.memory_space<vmem>>, vector<1x128x128xf32>
    %8 = vector.shape_cast %7 : vector<1x128x128xf32> to vector<128x128xf32>
    %cst = arith.constant dense<0.000000e+00> : vector<8x128xf32>
    %9 = tpu.matmul %0, %8, %cst {dimension_numbers = #tpu.dot_dimension_numbers<[1], [0], [0], [1], [0, 0, 1, 1], [], []>} : vector<8x128xf32>, vector<128x128xf32>, vector<8x128xf32> -> vector<8x128xf32>
    %10 = vector.broadcast %2 : vector<1x128xf32> to vector<8x128xf32>
    %11 = arith.addf %9, %10 : vector<8x128xf32>
    %cst_5 = arith.constant 0.00999999977 : f32
    %12 = vector.broadcast %cst_5 : f32 to vector<8x128xf32>
    %13 = arith.mulf %12, %11 : vector<8x128xf32>
    %14 = arith.maximumf %11, %13 : vector<8x128xf32>
    %c1 = arith.constant 1 : index
    %c0_6 = arith.constant 0 : index
    %c0_7 = arith.constant 0 : index
    %15 = vector.load %arg1[%c1, %c0_6, %c0_7] : memref<3x128x128xf32, #tpu.memory_space<vmem>>, vector<1x128x128xf32>
    %16 = vector.shape_cast %15 : vector<1x128x128xf32> to vector<128x128xf32>
    %cst_8 = arith.constant dense<0.000000e+00> : vector<8x128xf32>
    %17 = tpu.matmul %14, %16, %cst_8 {dimension_numbers = #tpu.dot_dimension_numbers<[1], [0], [0], [1], [0, 0, 1, 1], [], []>} : vector<8x128xf32>, vector<128x128xf32>, vector<8x128xf32> -> vector<8x128xf32>
    %18 = vector.broadcast %3 : vector<1x128xf32> to vector<8x128xf32>
    %19 = arith.addf %17, %18 : vector<8x128xf32>
    %cst_9 = arith.constant 0.00999999977 : f32
    %20 = vector.broadcast %cst_9 : f32 to vector<8x128xf32>
    %21 = arith.mulf %20, %19 : vector<8x128xf32>
    %22 = arith.maximumf %19, %21 : vector<8x128xf32>
    %c2 = arith.constant 2 : index
    %c0_10 = arith.constant 0 : index
    %c0_11 = arith.constant 0 : index
    %23 = vector.load %arg1[%c2, %c0_10, %c0_11] : memref<3x128x128xf32, #tpu.memory_space<vmem>>, vector<1x128x128xf32>
    %24 = vector.shape_cast %23 : vector<1x128x128xf32> to vector<128x128xf32>
    %cst_12 = arith.constant dense<0.000000e+00> : vector<8x128xf32>
    %25 = tpu.matmul %22, %24, %cst_12 {dimension_numbers = #tpu.dot_dimension_numbers<[1], [0], [0], [1], [0, 0, 1, 1], [], []>} : vector<8x128xf32>, vector<128x128xf32>, vector<8x128xf32> -> vector<8x128xf32>
    %26 = vector.broadcast %4 : vector<1x128xf32> to vector<8x128xf32>
    %27 = arith.addf %25, %26 : vector<8x128xf32>
    %cst_13 = arith.constant 0.00999999977 : f32
    %28 = vector.broadcast %cst_13 : f32 to vector<8x128xf32>
    %29 = arith.mulf %28, %27 : vector<8x128xf32>
    %30 = arith.maximumf %27, %29 : vector<8x128xf32>
    %cst_14 = arith.constant dense<0.000000e+00> : vector<128xf32>
    %31 = vector.multi_reduction <add>, %30, %cst_14 [0] : vector<8x128xf32> to vector<128xf32>
    %32 = vector.shape_cast %31 : vector<128xf32> to vector<1x128xf32>
    %33 = arith.mulf %30, %30 : vector<8x128xf32>
    %cst_15 = arith.constant dense<0.000000e+00> : vector<128xf32>
    %34 = vector.multi_reduction <add>, %33, %cst_15 [0] : vector<8x128xf32> to vector<128xf32>
    %35 = vector.shape_cast %34 : vector<128xf32> to vector<1x128xf32>
    %cst_16 = arith.constant 1.250000e-01 : f32
    %36 = vector.broadcast %cst_16 : f32 to vector<1x128xf32>
    %37 = arith.mulf %32, %36 : vector<1x128xf32>
    %cst_17 = arith.constant 1.250000e-01 : f32
    %38 = vector.broadcast %cst_17 : f32 to vector<1x128xf32>
    %39 = arith.mulf %35, %38 : vector<1x128xf32>
    %40 = arith.mulf %37, %37 : vector<1x128xf32>
    %41 = arith.subf %39, %40 : vector<1x128xf32>
    %cst_18 = arith.constant 9.99999974E-6 : f32
    %42 = vector.broadcast %cst_18 : f32 to vector<1x128xf32>
    %43 = arith.addf %41, %42 : vector<1x128xf32>
    %44 = math.rsqrt %43 : vector<1x128xf32>
    %45 = arith.mulf %5, %44 : vector<1x128xf32>
    %46 = vector.broadcast %45 : vector<1x128xf32> to vector<8x128xf32>
    %47 = arith.mulf %30, %46 : vector<8x128xf32>
    %48 = arith.mulf %37, %45 : vector<1x128xf32>
    %49 = arith.subf %6, %48 : vector<1x128xf32>
    %50 = vector.broadcast %49 : vector<1x128xf32> to vector<8x128xf32>
    %51 = arith.addf %47, %50 : vector<8x128xf32>
    %52 = math.tanh %51 : vector<8x128xf32>
    %c0_19 = arith.constant 0 : index
    %c0_20 = arith.constant 0 : index
    %53 = vector.load %arg2[%c0_19, %c0_20] : memref<8x128xf32, #tpu.memory_space<vmem>>, vector<8x128xf32>
    tpu.vector_store %arg2[%c0_19, %c0_20], %52 {strides = array<i32>} : memref<8x128xf32, #tpu.memory_space<vmem>>, vector<8x128xf32>,
    return
  }
}

</mosaic_0001>

<bundles_post_ra>
// kernel: actor_forward.1
= control target key start
LH: loop header
LB: loop body
LE: loop exit
PB: predicated region body
PF: predicated region fallthrough
CT: control target
= control target key end

     0   :  { %7 = vsyncpa [#allocation3], 0  ;;  %s534_s9 = smov [#allocation2]   ;;  %s627_s0 = inlined_call_operand.vmem [shape: f32[16,128], index: 0, kind: input, shape index: {}]   ;;  %s628_s1 = inlined_call_operand.hbm [shape: f32[3,128,128], index: 1, kind: input, shape index: {}]   ;;  %s629_s2 = inlined_call_operand.vmem [shape: f32[8,128], index: 2, kind: output, shape index: {}]  }
   0x1   :  { %s15_s10 = sshll.u32 %s534_s9, 4  ;;  %s16_s10 = int_to_ptr.vmem [resolvable:$true] %s15_s10 }
   0x2   :  { %s520_s11 = scalar_lea.vmem %s16_s10, 6144  ;;  %p525_p1 = scmp.lt.s32.totalorder %s16_s10, %s16_s10 }
   0x3   :  { %p521_p0 = scmp.ne.s32.totalorder %s16_s10, %s520_s11  ;;  %p526_p2 = scmp.lt.s32.totalorder %s520_s11, %s520_s11 }
   0x5   :  { %p527_p3 = por %p526_p2, %p525_p1 }
   0x7   :  { %p528_p4 = pnand %p527_p3, %p521_p0 }
   0x9   :  { %531 = shalt.err (!%p528_p4)
}
   0xa   :  { %s535_s12 = smov 128   ;;  %s536_s13 = smov 8  }
   0xb   :  { %21 = dma.hbm_to_vmem [thread:$0]  %s628_s1, 6144, %s16_s10, [#allocation3], %s535_s12, %s535_s12, %s536_s13  }
   0xc   :  { %532 = dma.done.wait [#allocation3], 6144  }
   0xd   :  { %533 = vsyncadd [#allocation3], 4294961152  ;;  %v537_v0 = vmov 0.0   ;;  %vm538_vm0 = vmmov 0   ;;  %v42_v1 = vld [vmem:[#allocation2 + $0x78] sm:$0xff]  ;;  %v41_v2 = vld [vmem:[#allocation2 + $0x70] sm:$0xff]  ;;  %v43_v46 = vlaneseq }
   0xe   :  { %398 = vmatprep.subr.mxu0 %v537_v0  ;;  %430 = vmatprep.mubr.msk.f32.mxu0 %vm538_vm0, %v537_v0  ;;  %v40_v3 = vld [vmem:[#allocation2 + $0x68] sm:$0xff]  ;;  %v39_v4 = vld [vmem:[#allocation2 + $0x60] sm:$0xff]  ;;  %v135_v5 = vld [vmem:[#allocation2 + $0xf8] sm:$0xff] }
   0xf   :  { %433 = vmatprep.subr.mxu1 %v537_v0  ;;  %465 = vmatprep.mubr.msk.f32.mxu1 %vm538_vm0, %v537_v0  ;;  %v38_v6 = vld [vmem:[#allocation2 + $0x58] sm:$0xff]  ;;  %v134_v7 = vld [vmem:[#allocation2 + $0xf0] sm:$0xff]  ;;  %v133_v8 = vld [vmem:[#allocation2 + $0xe8] sm:$0xff]  ;;  %v611_v47 = vshrl.u32 %v43_v46, 7 }
  0x10   :  { %399 = vmatpush3.msra.mxu0 %v42_v1  ;;  %434 = vmatpush3.msra.mxu1 %v135_v5  ;;  %v37_v9 = vld [vmem:[#allocation2 + $0x50] sm:$0xff]  ;;  %v132_v10 = vld [vmem:[#allocation2 + $0xe0] sm:$0xff]  ;;  %v36_v11 = vld [vmem:[#allocation2 + $0x48] sm:$0xff] }
  0x11   :  { %400 = vmatprep.subr.mxu0 %v537_v0  ;;  %435 = vmatprep.subr.mxu1 %v537_v0  ;;  %v131_v12 = vld [vmem:[#allocation2 + $0xd8] sm:$0xff]  ;;  %v35_v13 = vld [vmem:[#allocation2 + $0x40] sm:$0xff]  ;;  %v130_v14 = vld [vmem:[#allocation2 + $0xd0] sm:$0xff]  ;;  %v45_v48 = vsub.s32 0, %v611_v47  ;;  %v138_v60 = vsub.s32 1, %v611_v47 }
  0x12   :  { %401 = vmatpush3.msra.mxu0 %v41_v2  ;;  %436 = vmatpush3.msra.mxu1 %v134_v7  ;;  %v34_v15 = vld [vmem:[#allocation2 + $0x38] sm:$0xff]  ;;  %v129_v16 = vld [vmem:[#allocation2 + $0xc8] sm:$0xff]  ;;  %v33_v17 = vld [vmem:[#allocation2 + $0x30] sm:$0xff] }
  0x13   :  { %402 = vmatprep.subr.mxu0 %v537_v0  ;;  %437 = vmatprep.subr.mxu1 %v537_v0  ;;  %v128_v18 = vld [vmem:[#allocation2 + $0xc0] sm:$0xff]  ;;  %v32_v19 = vld [vmem:[#allocation2 + $0x28] sm:$0xff]  ;;  %v127_v20 = vld [vmem:[#allocation2 + $0xb8] sm:$0xff] }
  0x14   :  { %403 = vmatpush3.msra.mxu0 %v40_v3  ;;  %438 = vmatpush3.msra.mxu1 %v133_v8  ;;  %v31_v21 = vld [vmem:[#allocation2 + $0x20] sm:$0xff]  ;;  %v126_v22 = vld [vmem:[#allocation2 + $0xb0] sm:$0xff]  ;;  %v30_v23 = vld [vmem:[#allocation2 + $0x18] sm:$0xff] }
  0x15   :  { %404 = vmatprep.subr.mxu0 %v537_v0  ;;  %439 = vmatprep.subr.mxu1 %v537_v0  ;;  %v125_v24 = vld [vmem:[#allocation2 + $0xa8] sm:$0xff]  ;;  %v29_v25 = vld [vmem:[#allocation2 + $0x10] sm:$0xff]  ;;  %v124_v26 = vld [vmem:[#allocation2 + $0xa0] sm:$0xff] }
  0x16   :  { %405 = vmatpush3.msra.mxu0 %v39_v4  ;;  %440 = vmatpush3.msra.mxu1 %v132_v10  ;;  %v28_v27 = vld [vmem:[#allocation2 + $0x8] sm:$0xff]  ;;  %v27_v28 = vld [vmem:[#allocation2] sm:$0xff]  ;;  %v123_v30 = vld [vmem:[#allocation2 + $0x98] sm:$0xff]  ;;  %v231_v4 = vsub.s32 2, %v611_v47 }
  0x17   :  { %406 = vmatprep.subr.mxu0 %v537_v0  ;;  %441 = vmatprep.subr.mxu1 %v537_v0  ;;  %v25_v29 = vld [vmem:[%s627_s0] sm:$0xff]  ;;  %v122_v31 = vld [vmem:[#allocation2 + $0x90] sm:$0xff]  ;;  %v121_v32 = vld [vmem:[#allocation2 + $0x88] sm:$0xff] }
  0x18   :  { %407 = vmatpush3.msra.mxu0 %v38_v6  ;;  %442 = vmatpush3.msra.mxu1 %v131_v12  ;;  %v120_v33 = vld [vmem:[#allocation2 + $0x80] sm:$0xff]  ;;  %v228_v34 = vld [vmem:[#allocation2 + $0x178] sm:$0xff]  ;;  %v227_v35 = vld [vmem:[#allocation2 + $0x170] sm:$0xff] }
  0x19   :  { %408 = vmatprep.subr.mxu0 %v537_v0  ;;  %443 = vmatprep.subr.mxu1 %v537_v0  ;;  %v226_v36 = vld [vmem:[#allocation2 + $0x168] sm:$0xff]  ;;  %v225_v37 = vld [vmem:[#allocation2 + $0x160] sm:$0xff]  ;;  %v224_v38 = vld [vmem:[#allocation2 + $0x158] sm:$0xff] }
  0x1a   :  { %409 = vmatpush3.msra.mxu0 %v37_v9  ;;  %444 = vmatpush3.msra.mxu1 %v130_v14  ;;  %v223_v39 = vld [vmem:[#allocation2 + $0x150] sm:$0xff]  ;;  %v222_v40 = vld [vmem:[#allocation2 + $0x148] sm:$0xff]  ;;  %v221_v41 = vld [vmem:[#allocation2 + $0x140] sm:$0xff] }
  0x1b   :  { %410 = vmatprep.subr.mxu0 %v537_v0  ;;  %445 = vmatprep.subr.mxu1 %v537_v0  ;;  %v220_v42 = vld [vmem:[#allocation2 + $0x138] sm:$0xff]  ;;  %v219_v43 = vld [vmem:[#allocation2 + $0x130] sm:$0xff]  ;;  %v218_v44 = vld [vmem:[#allocation2 + $0x128] sm:$0xff] }
  0x1c   :  { %411 = vmatpush3.msra.mxu0 %v36_v11  ;;  %446 = vmatpush3.msra.mxu1 %v129_v16  ;;  %v217_v45 = vld [vmem:[#allocation2 + $0x120] sm:$0xff]  ;;  %v26_v49 = vld [vmem:[%s627_s0 + $0x8] sm:$0xff]  ;;  %v216_v56 = vld [vmem:[#allocation2 + $0x118] sm:$0xff] }
  0x1d   :  { %412 = vmatprep.subr.mxu0 %v537_v0  ;;  %447 = vmatprep.subr.mxu1 %v537_v0  ;;  %v46_v50 = vrot.slane %v26_v49, %v45_v48  ;;  %v215_v57 = vld [vmem:[#allocation2 + $0x110] sm:$0xff]  ;;  %v214_v58 = vld [vmem:[#allocation2 + $0x108] sm:$0xff]  ;;  %v213_v59 = vld [vmem:[#allocation2 + $0x100] sm:$0xff]  ;;  %v139_v61 = vrot.slane %v26_v49, %v138_v60  ;;  %v232_v5 = vrot.slane %v26_v49, %v231_v4 }
  0x1e   :  { %413 = vmatpush3.msra.mxu0 %v35_v13  ;;  %448 = vmatpush3.msra.mxu1 %v128_v18 }
  0x1f   :  { %414 = vmatprep.subr.mxu0 %v537_v0  ;;  %449 = vmatprep.subr.mxu1 %v537_v0 }
  0x20   :  { %415 = vmatpush3.msra.mxu0 %v34_v15  ;;  %450 = vmatpush3.msra.mxu1 %v127_v20 }
  0x21   :  { %416 = vmatprep.subr.mxu0 %v537_v0  ;;  %451 = vmatprep.subr.mxu1 %v537_v0 }
  0x22   :  { %417 = vmatpush3.msra.mxu0 %v33_v17  ;;  %452 = vmatpush3.msra.mxu1 %v126_v22 }
  0x23   :  { %418 = vmatprep.subr.mxu0 %v537_v0  ;;  %453 = vmatprep.subr.mxu1 %v537_v0 }
  0x24   :  { %419 = vmatpush3.msra.mxu0 %v32_v19  ;;  %454 = vmatpush3.msra.mxu1 %v125_v24 }
  0x25   :  { %420 = vmatprep.subr.mxu0 %v537_v0  ;;  %455 = vmatprep.subr.mxu1 %v537_v0 }
  0x26   :  { %421 = vmatpush3.msra.mxu0 %v31_v21  ;;  %456 = vmatpush3.msra.mxu1 %v124_v26 }
  0x27   :  { %422 = vmatprep.subr.mxu0 %v537_v0  ;;  %457 = vmatprep.subr.mxu1 %v537_v0 }
  0x28   :  { %423 = vmatpush3.msra.mxu0 %v30_v23  ;;  %458 = vmatpush3.msra.mxu1 %v123_v30  ;;  %v327_v30 = vsub.s32 3, %v611_v47 }
  0x29   :  { %424 = vmatprep.subr.mxu0 %v537_v0  ;;  %459 = vmatprep.subr.mxu1 %v537_v0 }
  0x2a   :  { %425 = vmatpush3.msra.mxu0 %v29_v25  ;;  %460 = vmatpush3.msra.mxu1 %v122_v31 }
  0x2b   :  { %426 = vmatprep.subr.mxu0 %v537_v0  ;;  %461 = vmatprep.subr.mxu1 %v537_v0 }
  0x2c   :  { %427 = vmatpush3.msra.mxu0 %v28_v27  ;;  %462 = vmatpush3.msra.mxu1 %v121_v32 }
  0x2d   :  { %428 = vmatprep.subr.mxu0 %v537_v0  ;;  %463 = vmatprep.subr.mxu1 %v537_v0 }
  0x2e   :  { %429 = vmatpush3.msra.mxu0 %v27_v28  ;;  %464 = vmatpush3.msra.mxu1 %v120_v33 }
  0x2f   :  { %431 = vmatmul.mubr.f32.vlgmr.msra.gmra.mxu0 %v25_v29  ;;  %468 = vmatprep.subr.mxu0 %v537_v0 }
  0x30   :  { %500 = vmatprep.mubr.msk.f32.mxu0 %vm538_vm0, %v537_v0  ;;  %469 = vmatpush3.msra.mxu0 %v228_v34  ;;  %v337_v34 = vsub.s32 4, %v611_v47 }
  0x31   :  { %470 = vmatprep.subr.mxu0 %v537_v0 }
  0x32   :  { %471 = vmatpush3.msra.mxu0 %v227_v35 }
  0x33   :  { %472 = vmatprep.subr.mxu0 %v537_v0 }
  0x34   :  { %473 = vmatpush3.msra.mxu0 %v226_v36 }
  0x35   :  { %474 = vmatprep.subr.mxu0 %v537_v0 }
  0x36   :  { %475 = vmatpush3.msra.mxu0 %v225_v37 }
  0x37   :  { %476 = vmatprep.subr.mxu0 %v537_v0 }
  0x38   :  { %477 = vmatpush3.msra.mxu0 %v224_v38 }
  0x39   :  { %478 = vmatprep.subr.mxu0 %v537_v0 }
  0x3a   :  { %479 = vmatpush3.msra.mxu0 %v223_v39 }
  0x3b   :  { %480 = vmatprep.subr.mxu0 %v537_v0 }
  0x3c   :  { %481 = vmatpush3.msra.mxu0 %v222_v40 }
  0x3d   :  { %482 = vmatprep.subr.mxu0 %v537_v0 }
  0x3e   :  { %483 = vmatpush3.msra.mxu0 %v221_v41 }
  0x3f   :  { %484 = vmatprep.subr.mxu0 %v537_v0 }
  0x40   :  { %485 = vmatpush3.msra.mxu0 %v220_v42 }
  0x41   :  { %486 = vmatprep.subr.mxu0 %v537_v0 }
  0x42   :  { %487 = vmatpush3.msra.mxu0 %v219_v43 }
  0x43   :  { %488 = vmatprep.subr.mxu0 %v537_v0 }
  0x44   :  { %489 = vmatpush3.msra.mxu0 %v218_v44 }
  0x45   :  { %490 = vmatprep.subr.mxu0 %v537_v0 }
  0x46   :  { %491 = vmatpush3.msra.mxu0 %v217_v45 }
  0x47   :  { %492 = vmatprep.subr.mxu0 %v537_v0 }
  0x48   :  { %493 = vmatpush3.msra.mxu0 %v216_v56 }
  0x49   :  { %494 = vmatprep.subr.mxu0 %v537_v0 }
  0x4a   :  { %495 = vmatpush3.msra.mxu0 %v215_v57 }
  0x4b   :  { %496 = vmatprep.subr.mxu0 %v537_v0 }
  0x4c   :  { %497 = vmatpush3.msra.mxu0 %v214_v58 }
  0x4d   :  { %498 = vmatprep.subr.mxu0 %v537_v0 }
  0x4e   :  { %499 = vmatpush3.msra.mxu0 %v213_v59 }
  0xef   :  { %v113_v51 = vpop.f32.mrf.mxu0 }
  0xf0   :  { %v114_v52 = vadd.f32 %v113_v51, %v46_v50 }
  0xf1   :  { %v432_v53 = vpop.f32.mrf.mxu0 }
  0xf2   :  { %v117_v54 = vmul.f32 0.01, %v114_v52 }
  0xf4   :  { %v118_v55 = vmax.f32 %v114_v52, %v117_v54 }
  0xf6   :  { %466 = vmatmul.mubr.f32.vlgmr.msra.gmra.mxu1 %v118_v55 }
 0x1b6   :  { %v206_v62 = vpop.f32.mrf.mxu1 }
 0x1b7   :  { %v207_v63 = vadd.f32 %v206_v62, %v139_v61 }
 0x1b8   :  { %v467_v1 = vpop.f32.mrf.mxu1 }
 0x1b9   :  { %v210_v2 = vmul.f32 0.01, %v207_v63 }
 0x1bb   :  { %v211_v3 = vmax.f32 %v207_v63, %v210_v2 }
 0x1bd   :  { %501 = vmatmul.mubr.f32.vlgmr.msra.gmra.mxu0 %v211_v3 }
 0x27d   :  { %v299_v6 = vpop.f32.mrf.mxu0 }
 0x27e   :  { %v300_v7 = vadd.f32 %v299_v6, %v232_v5 }
 0x27f   :  { %v502_v8 = vpop.f32.mrf.mxu0 }
 0x280   :  { %v303_v9 = vmul.f32 0.01, %v300_v7 }
 0x282   :  { %v304_v10 = vmax.f32 %v300_v7, %v303_v9 }
 0x284   :  { %v305_v0 = vrot.slane %v304_v10, 4  ;;  %v311_v11 = vmul.f32 %v304_v10, %v304_v10 }
 0x286   :  { %v306_v12 = vadd.f32 %v305_v0, %v304_v10  ;;  %v312_v13 = vrot.slane %v311_v11, 4 }
 0x288   :  { %v307_v14 = vrot.slane %v306_v12, 2  ;;  %v313_v15 = vadd.f32 %v312_v13, %v311_v11 }
 0x28a   :  { %v308_v16 = vadd.f32 %v307_v14, %v306_v12  ;;  %v314_v17 = vrot.slane %v313_v15, 2 }
 0x28c   :  { %v309_v18 = vrot.slane %v308_v16, 1  ;;  %v315_v19 = vadd.f32 %v314_v17, %v313_v15 }
 0x28e   :  { %v310_v20 = vadd.f32 %v309_v18, %v308_v16  ;;  %v316_v21 = vrot.slane %v315_v19, 1 }
 0x290   :  { %v317_v22 = vadd.f32 %v316_v21, %v315_v19  ;;  %v318_v23 = vmul.f32 0.125, %v310_v20 }
 0x292   :  { %v319_v24 = vmul.f32 0.125, %v317_v22  ;;  %v320_v25 = vmul.f32 %v318_v23, %v318_v23 }
 0x294   :  { %v321_v26 = vsub.f32 %v319_v24, %v320_v25 }
 0x296   :  { %v322_v27 = vadd.f32 1e-05, %v321_v26 }
 0x298   :  { %508 = vrsqrt.f32 %v322_v27 }
 0x2a5   :  { %v509_v28 = vpop.eup %508 }
 0x2a6   :  { %v324_v29 = vmul.f32 %v509_v28, %v26_v49 }
 0x2a8   :  { %v330_v31 = vmul.f32 %v324_v29, %v318_v23  ;;  %v328_v32 = vrot.slane %v324_v29, %v327_v30 }
 0x2aa   :  { %v332_v33 = vrot.slane %v330_v31, 7  ;;  %v329_v36 = vmul.f32 %v328_v32, %v304_v10 }
 0x2ac   :  { %v334_v35 = vsub.f32 %v26_v49, %v332_v33 }
 0x2ae   :  { %v338_v37 = vrot.slane %v334_v35, %v337_v34 }
 0x2b0   :  { %v339_v38 = vadd.f32 %v338_v37, %v329_v36 }
 0x2b2   :  { %510 = vtanh.f32 %v339_v38 }
 0x2bf   :  { %v511_v39 = vpop.eup %510 }
 0x2c0   :  { %341 = vst [vmem:[%s629_s2] sm:$0xff] %v511_v39 }
 0x2c1   :  { %346 = vsyncpa [#allocation3], 1 }

</bundles_post_ra>
